<compile_context>
chip_gen: v6e
topology: v6e:2x2x1
jax: 0.10.0
libtpu: 0.0.40
codegen_flags: <defaults>
</compile_context>

<pallas_src>
import jax
import jax.numpy as jnp
import numpy as np
from jax.experimental import pallas as pl
from jax.experimental.pallas import tpu as pltpu

# ---- config (mirrors args of the PyTorch module) ----
PATCHS = 2           # args.patchs
IMAGE_SIZE = 16      # args.image_size
EMBED_DIM = 32       # args.embed_dim
SCALE_SIZE = 4       # args.scale_size
BATCH = 2

G = PATCHS * PATCHS                                   # groups (one per patch)
K = IMAGE_SIZE // PATCHS                              # conv1 kernel == stride
SCALE = (SCALE_SIZE // PATCHS) if PATCHS < SCALE_SIZE else (PATCHS // SCALE_SIZE)
C_FEAT = G * 2 * SCALE * SCALE                        # feature channels (2 per group post-shuffle)
HF = K // SCALE                                       # feature spatial size pre pixel-shuffle
F_IMG = 3 * IMAGE_SIZE * IMAGE_SIZE                   # flattened raw image length
F_FEAT = C_FEAT * HF * HF                             # flattened raw feature length
GE = G * EMBED_DIM                                    # lane-dense output width (= 128 here)


# ------------------------- Pallas kernel -------------------------

def fused_proj_kernel(img_ref, feat_ref, wi_ref, wf_ref, b_ref, out_ref):
    # img_ref:  (B, 3*H*W)      wi_ref: (3*H*W,   G*E)
    # feat_ref: (B, C*Hf*Wf)    wf_ref: (C*Hf*Wf, G*E)
    # b_ref:    (1, G*E)        out_ref: (B, G*E)   (lane-dense, 128 wide)
    acc = jnp.dot(img_ref[...], wi_ref[...], preferred_element_type=jnp.float32)
    acc = acc + jnp.dot(feat_ref[...], wf_ref[...], preferred_element_type=jnp.float32)
    out_ref[...] = acc + b_ref[...]


# ------------------------- weight folding (runs once) -------------------------

def prepare_params(w1x1, b1x1, w1, b1):
    """Fold conv1x1 + patchify + PixelShuffle + grouped conv1 into two dense
    weights acting directly on the raw (contiguously flattened) inputs."""
    r = SCALE
    w1g = w1.reshape(G, EMBED_DIM, 3, K, K)                  # (G, E, 3, K, K)
    eye_g = jnp.eye(G, dtype=w1.dtype)                       # (g, g')

    # ---- image path: conv1x1 folded into the per-patch image-channel weight ----
    w_img_patch = w1g[:, :, 0, :, :]                         # (G, E, K, K)
    # U[g, h, w, g', e] = w_img_patch[g, e, h, w] * (g == g')
    U = (w_img_patch.transpose(0, 2, 3, 1)[:, :, :, None, :]
         * eye_g[:, None, None, :, None])                    # (G, K, K, G, E)
    U = U.reshape(PATCHS, PATCHS, K, K, G, EMBED_DIM)        # (ph, pw, h, w, g', e)
    U = U.transpose(0, 2, 1, 3, 4, 5)                        # (ph, h, pw, w, g', e)
    W_img_sp = U.reshape(IMAGE_SIZE * IMAGE_SIZE, GE)        # (H*W, G*E)
    W_img = (w1x1.reshape(3, 1, 1) * W_img_sp[None]).reshape(F_IMG, GE)

    # ---- feature path: PixelShuffle permutation folded into the weight ----
    w_feat_patch = w1g[:, :, 1:, :, :]                       # (G, E, 2, K, K)
    T = w_feat_patch.reshape(G, EMBED_DIM, 2, HF, r, HF, r)  # (g, e, co, i, r1, j, r2)
    T = T.transpose(0, 2, 4, 6, 3, 5, 1)                     # (g, co, r1, r2, i, j, e)
    Wf = (T[..., None, :]
          * eye_g[:, None, None, None, None, None, :, None]) # (g, co, r1, r2, i, j, g', e)
    W_feat = Wf.reshape(F_FEAT, GE)

    # ---- bias: conv1 bias + conv1x1 bias routed through the image weights ----
    b_eff = (b1.reshape(GE)
             + b1x1.reshape(()) * w_img_patch.sum(axis=(2, 3)).reshape(GE))

    return (W_img.astype(jnp.float32),
            W_feat.astype(jnp.float32),
            b_eff.reshape(1, GE).astype(jnp.float32))


# ------------------------- full forward -------------------------

@jax.jit
def feature2patch(features, image, W_img, W_feat, b_eff):
    B = image.shape[0]
    img_flat = image.reshape(B, F_IMG)        # contiguous flatten (no data movement)
    feat_flat = features.reshape(B, F_FEAT)   # contiguous flatten (no data movement)

    out = pl.pallas_call(
        fused_proj_kernel,
        out_shape=jax.ShapeDtypeStruct((B, GE), jnp.float32),
        in_specs=[pl.BlockSpec(memory_space=pltpu.MemorySpace.VMEM)] * 5,
        out_specs=pl.BlockSpec(memory_space=pltpu.MemorySpace.VMEM),
    )(img_flat, feat_flat, W_img, W_feat, b_eff)

    return out.reshape(B, G, EMBED_DIM)


# ------------------------- pure-JAX reference (mirrors PyTorch forward) -------------------------

def reference(features, image, w1x1, b1x1, w1, b1):
    B = image.shape[0]
    img1 = jnp.einsum('bchw,c->bhw', image, w1x1.reshape(3)) + b1x1.reshape(())
    img1 = img1[:, None, :, :]                                      # (B,1,H,W)
    # image -> per-patch tiles: (B, G, 1, K, K)
    img_p = img1.reshape(B, 1, PATCHS, K, PATCHS, K)
    img_p = img_p.transpose(0, 2, 4, 1, 3, 5).reshape(B, G, 1, K, K)
    # features -> per-group channels + PixelShuffle(SCALE): (B, G, 2, K, K)
    f = features.reshape(B, G, 2, SCALE, SCALE, HF, HF)
    f = f.transpose(0, 1, 2, 5, 3, 6, 4).reshape(B, G, 2, K, K)
    # concat + flatten per patch (c, h, w order)
    x = jnp.concatenate([img_p, f], axis=2).reshape(B, G, 3 * K * K)
    w = w1.reshape(G, EMBED_DIM, 3 * K * K)
    out = jnp.einsum('bgf,gef->bge', x, w) + b1.reshape(G, EMBED_DIM)[None]
    return out


if __name__ == "__main__":
    key = jax.random.PRNGKey(0)
    k1, k2, k3, k4, k5, k6 = jax.random.split(key, 6)

    image = jax.random.normal(k1, (BATCH, 3, IMAGE_SIZE, IMAGE_SIZE), jnp.float32)
    features = jax.random.normal(k2, (BATCH, C_FEAT, HF, HF), jnp.float32)

    # deterministic synthetic parameters (shapes from nn.Conv2d definitions)
    w1x1 = jax.random.normal(k3, (1, 3, 1, 1), jnp.float32) * 0.5                   # conv1x1 weight
    b1x1 = jax.random.normal(k4, (1,), jnp.float32) * 0.1                           # conv1x1 bias
    w1 = jax.random.normal(k5, (G * EMBED_DIM, 3, K, K), jnp.float32) / np.sqrt(3 * K * K)  # conv1 weight
    b1 = jax.random.normal(k6, (G * EMBED_DIM,), jnp.float32) * 0.1                 # conv1 bias

    # Fold all layout + conv1x1 into dense weights ONCE (weights are static).
    W_img, W_feat, b_eff = prepare_params(w1x1, b1x1, w1, b1)
    W_img, W_feat, b_eff = jax.block_until_ready((W_img, W_feat, b_eff))

    out = feature2patch(features, image, W_img, W_feat, b_eff)
    out = jax.block_until_ready(out)
    assert out.shape == (BATCH, G, EMBED_DIM), out.shape

    ref = jax.block_until_ready(reference(features, image, w1x1, b1x1, w1, b1))
    np.testing.assert_allclose(np.asarray(out), np.asarray(ref), rtol=2e-2, atol=2e-2)

    print("KERNEL_OK")
</pallas_src>

<mosaic_0001>
module attributes {stable_mosaic.version = 11 : i64} {
  func.func @fused_proj_kernel(%arg0: memref<2x768xf32, #tpu.memory_space<vmem>>, %arg1: memref<2x512xf32, #tpu.memory_space<vmem>>, %arg2: memref<768x128xf32, #tpu.memory_space<vmem>>, %arg3: memref<512x128xf32, #tpu.memory_space<vmem>>, %arg4: memref<1x128xf32, #tpu.memory_space<vmem>>, %arg5: memref<2x128xf32, #tpu.memory_space<vmem>>) attributes {dimension_semantics = [], scalar_prefetch = 0 : i64, scratch_operands = 0 : i64, tpu.core_type = #tpu.core_type<tc>} {
    %c0 = arith.constant 0 : index
    %c0_0 = arith.constant 0 : index
    %0 = vector.load %arg0[%c0, %c0_0] : memref<2x768xf32, #tpu.memory_space<vmem>>, vector<2x768xf32>
    %c0_1 = arith.constant 0 : index
    %c0_2 = arith.constant 0 : index
    %1 = vector.load %arg2[%c0_1, %c0_2] : memref<768x128xf32, #tpu.memory_space<vmem>>, vector<768x128xf32>
    %cst = arith.constant dense<0.000000e+00> : vector<2x128xf32>
    %2 = tpu.matmul %0, %1, %cst {dimension_numbers = #tpu.dot_dimension_numbers<[1], [0], [0], [1], [0, 0, 1, 1], [], []>} : vector<2x768xf32>, vector<768x128xf32>, vector<2x128xf32> -> vector<2x128xf32>
    %c0_3 = arith.constant 0 : index
    %c0_4 = arith.constant 0 : index
    %3 = vector.load %arg1[%c0_3, %c0_4] : memref<2x512xf32, #tpu.memory_space<vmem>>, vector<2x512xf32>
    %c0_5 = arith.constant 0 : index
    %c0_6 = arith.constant 0 : index
    %4 = vector.load %arg3[%c0_5, %c0_6] : memref<512x128xf32, #tpu.memory_space<vmem>>, vector<512x128xf32>
    %cst_7 = arith.constant dense<0.000000e+00> : vector<2x128xf32>
    %5 = tpu.matmul %3, %4, %cst_7 {dimension_numbers = #tpu.dot_dimension_numbers<[1], [0], [0], [1], [0, 0, 1, 1], [], []>} : vector<2x512xf32>, vector<512x128xf32>, vector<2x128xf32> -> vector<2x128xf32>
    %6 = arith.addf %2, %5 : vector<2x128xf32>
    %c0_8 = arith.constant 0 : index
    %c0_9 = arith.constant 0 : index
    %7 = vector.load %arg4[%c0_8, %c0_9] : memref<1x128xf32, #tpu.memory_space<vmem>>, vector<1x128xf32>
    %8 = vector.broadcast %7 : vector<1x128xf32> to vector<2x128xf32>
    %9 = arith.addf %6, %8 : vector<2x128xf32>
    %c0_10 = arith.constant 0 : index
    %c0_11 = arith.constant 0 : index
    %10 = vector.load %arg5[%c0_10, %c0_11] : memref<2x128xf32, #tpu.memory_space<vmem>>, vector<2x128xf32>
    tpu.vector_store %arg5[%c0_10, %c0_11], %9 {strides = array<i32>} : memref<2x128xf32, #tpu.memory_space<vmem>>, vector<2x128xf32>,
    return
  }
}

</mosaic_0001>

<bundles_post_ra>
// kernel: feature2patch.1
= control target key start
LH: loop header
LB: loop body
LE: loop exit
PB: predicated region body
PF: predicated region fallthrough
CT: control target
= control target key end

     0   :  { %10 = vsyncpa [#allocation3], 0  ;;  %s821_s18 = smov [#allocation2]   ;;  %s1076_s0 = inlined_call_operand.vmem [shape: f32[2,768], index: 0, kind: input, shape index: {}]   ;;  %s1077_s1 = inlined_call_operand.vmem [shape: f32[2,512], index: 1, kind: input, shape index: {}]   ;;  %s1078_s2 = inlined_call_operand.hbm [shape: f32[768,128], index: 2, kind: input, shape index: {}]   ;;  %s1079_s3 = inlined_call_operand.vmem [shape: f32[512,128], index: 3, kind: input, shape index: {}]   ;;  %s1080_s4 = inlined_call_operand.vmem [shape: f32[1,128], index: 4, kind: input, shape index: {}]   ;;  %s1081_s5 = inlined_call_operand.vmem [shape: f32[2,128], index: 5, kind: output, shape index: {}]  }
   0x1   :  { %s20_s19 = sshll.u32 %s821_s18, 4  ;;  %s21_s19 = int_to_ptr.vmem [resolvable:$true] %s20_s19 }
   0x2   :  { %s807_s20 = scalar_lea.vmem %s21_s19, 12288  ;;  %p812_p1 = scmp.lt.s32.totalorder %s21_s19, %s21_s19 }
   0x3   :  { %p808_p0 = scmp.ne.s32.totalorder %s21_s19, %s807_s20  ;;  %p813_p2 = scmp.lt.s32.totalorder %s807_s20, %s807_s20 }
   0x5   :  { %p814_p3 = por %p813_p2, %p812_p1 }
   0x7   :  { %p815_p4 = pnand %p814_p3, %p808_p0 }
   0x9   :  { %818 = shalt.err (!%p815_p4)
}
   0xa   :  { %s822_s21 = smov 128   ;;  %s823_s22 = smov 8  }
   0xb   :  { %26 = dma.hbm_to_vmem [thread:$0]  %s1078_s2, 12288, %s21_s19, [#allocation3], %s822_s21, %s822_s21, %s823_s22  }
   0xc   :  { %819 = dma.done.wait [#allocation3], 12288  }
   0xd   :  { %820 = vsyncadd [#allocation3], 4294955008  ;;  %v164_v0 = vld [vmem:[%s1079_s3 + $0xf8] sm:$0xff]  ;;  %v163_v4 = vld [vmem:[%s1079_s3 + $0xf0] sm:$0xff]  ;;  %v824_v30 = vmov 1983009808   ;;  %v202_v32 = vlaneseq }
   0xe   :  { %v196_v1 = vld [vmem:[%s1079_s3 + $0x1f8] sm:$0xff]  ;;  %618 = vmatprep.subr.mxu0 %v164_v0  ;;  %v195_v5 = vld [vmem:[%s1079_s3 + $0x1f0] sm:$0xff]  ;;  %v162_v8 = vld [vmem:[%s1079_s3 + $0xe8] sm:$0xff]  ;;  %v200_v31 = vunpack.c.l.s4 %v824_v30 }
   0xf   :  { %v148_v2 = vld [vmem:[%s1079_s3 + $0x78] sm:$0xff]  ;;  %653 = vmatprep.subr.mxu1 %v196_v1  ;;  %v147_v6 = vld [vmem:[%s1079_s3 + $0x70] sm:$0xff]  ;;  %v194_v9 = vld [vmem:[%s1079_s3 + $0x1e8] sm:$0xff]  ;;  %v203_v42 = vshrl.u32 %v202_v32, 7 }
  0x10   :  { %v180_v3 = vld [vmem:[%s1079_s3 + $0x178] sm:$0xff]  ;;  %619 = vmatpush3.msra.mxu0 %v148_v2  ;;  %v179_v7 = vld [vmem:[%s1079_s3 + $0x170] sm:$0xff]  ;;  %v146_v10 = vld [vmem:[%s1079_s3 + $0x68] sm:$0xff]  ;;  %v201_v41 = vunpack.c.0.s8 %v200_v31 }
  0x11   :  { %654 = vmatpush3.msra.mxu1 %v180_v3  ;;  %620 = vmatprep.subr.mxu0 %v163_v4  ;;  %v178_v11 = vld [vmem:[%s1079_s3 + $0x168] sm:$0xff]  ;;  %v161_v12 = vld [vmem:[%s1079_s3 + $0xe0] sm:$0xff]  ;;  %v160_v16 = vld [vmem:[%s1079_s3 + $0xd8] sm:$0xff] }
  0x12   :  { %655 = vmatprep.subr.mxu1 %v195_v5  ;;  %621 = vmatpush3.msra.mxu0 %v147_v6  ;;  %v193_v13 = vld [vmem:[%s1079_s3 + $0x1e0] sm:$0xff]  ;;  %v192_v17 = vld [vmem:[%s1079_s3 + $0x1d8] sm:$0xff]  ;;  %v159_v20 = vld [vmem:[%s1079_s3 + $0xd0] sm:$0xff]  ;;  %v996_v51 = vsub.s32 %v201_v41, %v203_v42 }
  0x13   :  { %656 = vmatpush3.msra.mxu1 %v179_v7  ;;  %622 = vmatprep.subr.mxu0 %v162_v8  ;;  %v145_v14 = vld [vmem:[%s1079_s3 + $0x60] sm:$0xff]  ;;  %v144_v18 = vld [vmem:[%s1079_s3 + $0x58] sm:$0xff]  ;;  %v191_v21 = vld [vmem:[%s1079_s3 + $0x1d0] sm:$0xff] }
  0x14   :  { %657 = vmatprep.subr.mxu1 %v194_v9  ;;  %v177_v15 = vld [vmem:[%s1079_s3 + $0x160] sm:$0xff]  ;;  %623 = vmatpush3.msra.mxu0 %v146_v10  ;;  %v176_v19 = vld [vmem:[%s1079_s3 + $0x158] sm:$0xff]  ;;  %v143_v22 = vld [vmem:[%s1079_s3 + $0x50] sm:$0xff] }
  0x15   :  { %658 = vmatpush3.msra.mxu1 %v178_v11  ;;  %624 = vmatprep.subr.mxu0 %v161_v12  ;;  %v175_v23 = vld [vmem:[%s1079_s3 + $0x150] sm:$0xff]  ;;  %v158_v24 = vld [vmem:[%s1079_s3 + $0xc8] sm:$0xff]  ;;  %v157_v28 = vld [vmem:[%s1079_s3 + $0xc0] sm:$0xff] }
  0x16   :  { %659 = vmatprep.subr.mxu1 %v193_v13  ;;  %625 = vmatpush3.msra.mxu0 %v145_v14  ;;  %v190_v25 = vld [vmem:[%s1079_s3 + $0x1c8] sm:$0xff]  ;;  %v189_v29 = vld [vmem:[%s1079_s3 + $0x1c0] sm:$0xff]  ;;  %v156_v35 = vld [vmem:[%s1079_s3 + $0xb8] sm:$0xff] }
  0x17   :  { %660 = vmatpush3.msra.mxu1 %v177_v15  ;;  %626 = vmatprep.subr.mxu0 %v160_v16  ;;  %v142_v26 = vld [vmem:[%s1079_s3 + $0x48] sm:$0xff]  ;;  %v141_v33 = vld [vmem:[%s1079_s3 + $0x40] sm:$0xff]  ;;  %v188_v36 = vld [vmem:[%s1079_s3 + $0x1b8] sm:$0xff] }
  0x18   :  { %661 = vmatprep.subr.mxu1 %v192_v17  ;;  %627 = vmatpush3.msra.mxu0 %v144_v18  ;;  %v174_v27 = vld [vmem:[%s1079_s3 + $0x148] sm:$0xff]  ;;  %v173_v34 = vld [vmem:[%s1079_s3 + $0x140] sm:$0xff]  ;;  %v140_v37 = vld [vmem:[%s1079_s3 + $0x38] sm:$0xff] }
  0x19   :  { %662 = vmatpush3.msra.mxu1 %v176_v19  ;;  %628 = vmatprep.subr.mxu0 %v159_v20  ;;  %v172_v38 = vld [vmem:[%s1079_s3 + $0x138] sm:$0xff]  ;;  %v155_v39 = vld [vmem:[%s1079_s3 + $0xb0] sm:$0xff]  ;;  %v154_v45 = vld [vmem:[%s1079_s3 + $0xa8] sm:$0xff] }
  0x1a   :  { %663 = vmatprep.subr.mxu1 %v191_v21  ;;  %629 = vmatpush3.msra.mxu0 %v143_v22  ;;  %v187_v40 = vld [vmem:[%s1079_s3 + $0x1b0] sm:$0xff]  ;;  %v186_v46 = vld [vmem:[%s1079_s3 + $0x1a8] sm:$0xff]  ;;  %v153_v49 = vld [vmem:[%s1079_s3 + $0xa0] sm:$0xff] }
  0x1b   :  { %664 = vmatpush3.msra.mxu1 %v175_v23  ;;  %630 = vmatprep.subr.mxu0 %v158_v24  ;;  %v139_v43 = vld [vmem:[%s1079_s3 + $0x30] sm:$0xff]  ;;  %v138_v47 = vld [vmem:[%s1079_s3 + $0x28] sm:$0xff]  ;;  %v185_v50 = vld [vmem:[%s1079_s3 + $0x1a0] sm:$0xff] }
  0x1c   :  { %665 = vmatprep.subr.mxu1 %v190_v25  ;;  %631 = vmatpush3.msra.mxu0 %v142_v26  ;;  %v171_v44 = vld [vmem:[%s1079_s3 + $0x130] sm:$0xff]  ;;  %v170_v48 = vld [vmem:[%s1079_s3 + $0x128] sm:$0xff]  ;;  %v137_v52 = vld [vmem:[%s1079_s3 + $0x20] sm:$0xff] }
  0x1d   :  { %666 = vmatpush3.msra.mxu1 %v174_v27  ;;  %632 = vmatprep.subr.mxu0 %v157_v28  ;;  %v169_v53 = vld [vmem:[%s1079_s3 + $0x120] sm:$0xff]  ;;  %v152_v55 = vld [vmem:[%s1079_s3 + $0x98] sm:$0xff]  ;;  %v151_v60 = vld [vmem:[%s1079_s3 + $0x90] sm:$0xff] }
  0x1e   :  { %667 = vmatprep.subr.mxu1 %v189_v29  ;;  %633 = vmatpush3.msra.mxu0 %v141_v33  ;;  %v132_v54 = vld [vmem:[%s1077_s1] sm:$0xff]  ;;  %v184_v56 = vld [vmem:[%s1079_s3 + $0x198] sm:$0xff]  ;;  %v183_v61 = vld [vmem:[%s1079_s3 + $0x190] sm:$0xff] }
  0x1f   :  { %668 = vmatpush3.msra.mxu1 %v173_v34  ;;  %634 = vmatprep.subr.mxu0 %v156_v35  ;;  %v198_v57 = vcombine.high %v132_v54, %v132_v54  ;;  %v136_v58 = vld [vmem:[%s1079_s3 + $0x18] sm:$0xff]  ;;  %v205_v62 = vrot.slane %v132_v54, %v996_v51  ;;  %v135_v63 = vld [vmem:[%s1079_s3 + $0x10] sm:$0xff]  ;;  %v150_v2 = vld [vmem:[%s1079_s3 + $0x88] sm:$0xff] }
  0x20   :  { %669 = vmatprep.subr.mxu1 %v188_v36  ;;  %635 = vmatpush3.msra.mxu0 %v140_v37  ;;  %v168_v59 = vld [vmem:[%s1079_s3 + $0x118] sm:$0xff]  ;;  %v167_v0 = vld [vmem:[%s1079_s3 + $0x110] sm:$0xff]  ;;  %v182_v3 = vld [vmem:[%s1079_s3 + $0x188] sm:$0xff] }
  0x21   :  { %670 = vmatpush3.msra.mxu1 %v172_v38  ;;  %636 = vmatprep.subr.mxu0 %v155_v39  ;;  %v212_v1 = vrot.slane %v198_v57, %v996_v51  ;;  %v134_v4 = vld [vmem:[%s1079_s3 + $0x8] sm:$0xff]  ;;  %v149_v6 = vld [vmem:[%s1079_s3 + $0x80] sm:$0xff]  ;;  %v213_v8 = vcombine.high %v205_v62, %v205_v62  ;;  %v67_v12 = vld [vmem:[#allocation2 + $0xf8] sm:$0xff] }
  0x22   :  { %671 = vmatprep.subr.mxu1 %v187_v40  ;;  %637 = vmatpush3.msra.mxu0 %v139_v43  ;;  %v166_v5 = vld [vmem:[%s1079_s3 + $0x108] sm:$0xff]  ;;  %v181_v7 = vld [vmem:[%s1079_s3 + $0x180] sm:$0xff]  ;;  %v99_v13 = vld [vmem:[#allocation2 + $0x1f8] sm:$0xff] }
  0x23   :  { %672 = vmatpush3.msra.mxu1 %v171_v44  ;;  %638 = vmatprep.subr.mxu0 %v154_v45  ;;  %v133_v9 = vld [vmem:[%s1079_s3] sm:$0xff]  ;;  %v214_v10 = vcombine.high %v212_v1, %v212_v1  ;;  %v51_v14 = vld [vmem:[#allocation2 + $0x78] sm:$0xff]  ;;  %v66_v16 = vld [vmem:[#allocation2 + $0xf0] sm:$0xff] }
  0x24   :  { %673 = vmatprep.subr.mxu1 %v186_v46  ;;  %639 = vmatpush3.msra.mxu0 %v138_v47  ;;  %v165_v11 = vld [vmem:[%s1079_s3 + $0x100] sm:$0xff]  ;;  %v83_v15 = vld [vmem:[#allocation2 + $0x178] sm:$0xff]  ;;  %v98_v17 = vld [vmem:[#allocation2 + $0x1f0] sm:$0xff] }
  0x25   :  { %674 = vmatpush3.msra.mxu1 %v170_v48  ;;  %640 = vmatprep.subr.mxu0 %v153_v49  ;;  %v50_v18 = vld [vmem:[#allocation2 + $0x70] sm:$0xff]  ;;  %v65_v20 = vld [vmem:[#allocation2 + $0xe8] sm:$0xff]  ;;  %v64_v24 = vld [vmem:[#allocation2 + $0xe0] sm:$0xff] }
  0x26   :  { %675 = vmatprep.subr.mxu1 %v185_v50  ;;  %641 = vmatpush3.msra.mxu0 %v137_v52  ;;  %v82_v19 = vld [vmem:[#allocation2 + $0x170] sm:$0xff]  ;;  %v97_v21 = vld [vmem:[#allocation2 + $0x1e8] sm:$0xff]  ;;  %v96_v25 = vld [vmem:[#allocation2 + $0x1e0] sm:$0xff] }
  0x27   :  { %676 = vmatpush3.msra.mxu1 %v169_v53  ;;  %642 = vmatprep.subr.mxu0 %v152_v55  ;;  %v49_v22 = vld [vmem:[#allocation2 + $0x68] sm:$0xff]  ;;  %v48_v26 = vld [vmem:[#allocation2 + $0x60] sm:$0xff]  ;;  %v63_v28 = vld [vmem:[#allocation2 + $0xd8] sm:$0xff] }
  0x28   :  { %677 = vmatprep.subr.mxu1 %v184_v56  ;;  %643 = vmatpush3.msra.mxu0 %v136_v58  ;;  %v81_v23 = vld [vmem:[#allocation2 + $0x168] sm:$0xff]  ;;  %v80_v27 = vld [vmem:[#allocation2 + $0x160] sm:$0xff]  ;;  %v95_v29 = vld [vmem:[#allocation2 + $0x1d8] sm:$0xff] }
  0x29   :  { %678 = vmatpush3.msra.mxu1 %v168_v59  ;;  %644 = vmatprep.subr.mxu0 %v151_v60  ;;  %v47_v30 = vld [vmem:[#allocation2 + $0x58] sm:$0xff]  ;;  %v62_v32 = vld [vmem:[#allocation2 + $0xd0] sm:$0xff]  ;;  %v61_v36 = vld [vmem:[#allocation2 + $0xc8] sm:$0xff] }
  0x2a   :  { %679 = vmatprep.subr.mxu1 %v183_v61  ;;  %645 = vmatpush3.msra.mxu0 %v135_v63  ;;  %v79_v31 = vld [vmem:[#allocation2 + $0x158] sm:$0xff]  ;;  %v94_v33 = vld [vmem:[#allocation2 + $0x1d0] sm:$0xff]  ;;  %v93_v37 = vld [vmem:[#allocation2 + $0x1c8] sm:$0xff] }
  0x2b   :  { %680 = vmatpush3.msra.mxu1 %v167_v0  ;;  %646 = vmatprep.subr.mxu0 %v150_v2  ;;  %v46_v34 = vld [vmem:[#allocation2 + $0x50] sm:$0xff]  ;;  %v45_v38 = vld [vmem:[#allocation2 + $0x48] sm:$0xff]  ;;  %v60_v40 = vld [vmem:[#allocation2 + $0xc0] sm:$0xff] }
  0x2c   :  { %681 = vmatprep.subr.mxu1 %v182_v3  ;;  %647 = vmatpush3.msra.mxu0 %v134_v4  ;;  %v78_v35 = vld [vmem:[#allocation2 + $0x150] sm:$0xff]  ;;  %v77_v39 = vld [vmem:[#allocation2 + $0x148] sm:$0xff]  ;;  %v92_v41 = vld [vmem:[#allocation2 + $0x1c0] sm:$0xff] }
  0x2d   :  { %682 = vmatpush3.msra.mxu1 %v166_v5  ;;  %648 = vmatprep.subr.mxu0 %v149_v6  ;;  %v44_v42 = vld [vmem:[#allocation2 + $0x40] sm:$0xff]  ;;  %v59_v44 = vld [vmem:[#allocation2 + $0xb8] sm:$0xff]  ;;  %v58_v48 = vld [vmem:[#allocation2 + $0xb0] sm:$0xff] }
  0x2e   :  { %683 = vmatprep.subr.mxu1 %v181_v7  ;;  %649 = vmatpush3.msra.mxu0 %v133_v9  ;;  %v76_v43 = vld [vmem:[#allocation2 + $0x140] sm:$0xff]  ;;  %v91_v45 = vld [vmem:[#allocation2 + $0x1b8] sm:$0xff]  ;;  %v90_v49 = vld [vmem:[#allocation2 + $0x1b0] sm:$0xff] }
  0x2f   :  { %283 = vmatprep.mubr.f32.mxu0 %v213_v8  ;;  %684 = vmatpush3.msra.mxu1 %v165_v11  ;;  %v43_v46 = vld [vmem:[#allocation2 + $0x38] sm:$0xff]  ;;  %v42_v50 = vld [vmem:[#allocation2 + $0x30] sm:$0xff]  ;;  %v57_v53 = vld [vmem:[#allocation2 + $0xa8] sm:$0xff] }
  0x30   :  { %353 = vmatprep.mubr.f32.mxu1 %v214_v10  ;;  %284 = vmatmul.mubr.f32.vlgmr.msra.gmra.mxu0 %v205_v62  ;;  %v75_v47 = vld [vmem:[#allocation2 + $0x138] sm:$0xff]  ;;  %v74_v52 = vld [vmem:[#allocation2 + $0x130] sm:$0xff]  ;;  %v89_v54 = vld [vmem:[#allocation2 + $0x1a8] sm:$0xff] }
  0x31   :  { %354 = vmatmul.mubr.f32.vlgmr.msra.gmra.mxu1 %v212_v1  ;;  %688 = vmatprep.subr.mxu0 %v67_v12  ;;  %v41_v55 = vld [vmem:[#allocation2 + $0x28] sm:$0xff]  ;;  %v34_v57 = vld [vmem:[%s1076_s0] sm:$0xff]  ;;  %v55_v62 = vld [vmem:[#allocation2 + $0x98] sm:$0xff] }
  0x32   :  { %723 = vmatprep.subr.mxu1 %v99_v13  ;;  %689 = vmatpush3.msra.mxu0 %v51_v14  ;;  %v73_v56 = vld [vmem:[#allocation2 + $0x128] sm:$0xff]  ;;  %v56_v58 = vld [vmem:[#allocation2 + $0xa0] sm:$0xff]  ;;  %v87_v63 = vld [vmem:[#allocation2 + $0x198] sm:$0xff]  ;;  %v368_v0 = vrot.slane %v34_v57, %v996_v51  ;;  %v361_v1 = vcombine.high %v34_v57, %v34_v57 }
  0x33   :  { %724 = vmatpush3.msra.mxu1 %v83_v15  ;;  %690 = vmatprep.subr.mxu0 %v66_v16  ;;  %v88_v59 = vld [vmem:[#allocation2 + $0x1a0] sm:$0xff]  ;;  %v39_v2 = vld [vmem:[#allocation2 + $0x18] sm:$0xff]  ;;  %v54_v4 = vld [vmem:[#allocation2 + $0x90] sm:$0xff] }
  0x34   :  { %725 = vmatprep.subr.mxu1 %v98_v17  ;;  %691 = vmatpush3.msra.mxu0 %v50_v18  ;;  %v40_v60 = vld [vmem:[#allocation2 + $0x20] sm:$0xff]  ;;  %v71_v3 = vld [vmem:[#allocation2 + $0x118] sm:$0xff]  ;;  %v86_v5 = vld [vmem:[#allocation2 + $0x190] sm:$0xff]  ;;  %v376_v10 = vcombine.high %v368_v0, %v368_v0  ;;  %v375_v11 = vrot.slane %v361_v1, %v996_v51 }
  0x35   :  { %726 = vmatpush3.msra.mxu1 %v82_v19  ;;  %692 = vmatprep.subr.mxu0 %v65_v20  ;;  %v72_v61 = vld [vmem:[#allocation2 + $0x120] sm:$0xff]  ;;  %v38_v6 = vld [vmem:[#allocation2 + $0x10] sm:$0xff]  ;;  %v53_v8 = vld [vmem:[#allocation2 + $0x88] sm:$0xff] }
  0x36   :  { %727 = vmatprep.subr.mxu1 %v97_v21  ;;  %693 = vmatpush3.msra.mxu0 %v49_v22  ;;  %v70_v7 = vld [vmem:[#allocation2 + $0x110] sm:$0xff]  ;;  %v85_v9 = vld [vmem:[#allocation2 + $0x188] sm:$0xff]  ;;  %v52_v13 = vld [vmem:[#allocation2 + $0x80] sm:$0xff]  ;;  %v377_v51 = vcombine.high %v375_v11, %v375_v11 }
  0x37   :  { %728 = vmatpush3.msra.mxu1 %v81_v23  ;;  %694 = vmatprep.subr.mxu0 %v64_v24  ;;  %v37_v12 = vld [vmem:[#allocation2 + $0x8] sm:$0xff]  ;;  %v36_v15 = vld [vmem:[#allocation2] sm:$0xff]  ;;  %v131_v18 = vld [vmem:[#allocation2 + $0x2f8] sm:$0xff] }
  0x38   :  { %729 = vmatprep.subr.mxu1 %v96_v25  ;;  %695 = vmatpush3.msra.mxu0 %v48_v26  ;;  %v69_v14 = vld [vmem:[#allocation2 + $0x108] sm:$0xff]  ;;  %v84_v16 = vld [vmem:[#allocation2 + $0x180] sm:$0xff]  ;;  %v115_v20 = vld [vmem:[#allocation2 + $0x278] sm:$0xff] }
  0x39   :  { %730 = vmatpush3.msra.mxu1 %v80_v27  ;;  %696 = vmatprep.subr.mxu0 %v63_v28  ;;  %v1065_v17 = vld.sshfl [vmem:[%s1076_s0 + $0x8] sm:$0x33 pattern:$0x76325410]  ;;  %v68_v19 = vld [vmem:[#allocation2 + $0x100] sm:$0xff]  ;;  %v130_v22 = vld [vmem:[#allocation2 + $0x2f0] sm:$0xff] }
  0x3a   :  { %731 = vmatprep.subr.mxu1 %v95_v29  ;;  %697 = vmatpush3.msra.mxu0 %v47_v30  ;;  %v385_v21 = vcombine.high %v1065_v17, %v1065_v17  ;;  %v114_v23 = vld [vmem:[#allocation2 + $0x270] sm:$0xff]  ;;  %v129_v24 = vld [vmem:[#allocation2 + $0x2e8] sm:$0xff]  ;;  %v128_v26 = vld [vmem:[#allocation2 + $0x2e0] sm:$0xff] }
  0x3b   :  { %732 = vmatpush3.msra.mxu1 %v79_v31  ;;  %698 = vmatprep.subr.mxu0 %v62_v32  ;;  %v113_v25 = vld [vmem:[#allocation2 + $0x268] sm:$0xff]  ;;  %v112_v27 = vld [vmem:[#allocation2 + $0x260] sm:$0xff]  ;;  %v127_v28 = vld [vmem:[#allocation2 + $0x2d8] sm:$0xff] }
  0x3c   :  { %733 = vmatprep.subr.mxu1 %v94_v33  ;;  %699 = vmatpush3.msra.mxu0 %v46_v34  ;;  %v111_v29 = vld [vmem:[#allocation2 + $0x258] sm:$0xff]  ;;  %v126_v30 = vld [vmem:[#allocation2 + $0x2d0] sm:$0xff]  ;;  %v125_v32 = vld [vmem:[#allocation2 + $0x2c8] sm:$0xff] }
  0x3d   :  { %734 = vmatpush3.msra.mxu1 %v78_v35  ;;  %700 = vmatprep.subr.mxu0 %v61_v36  ;;  %v110_v31 = vld [vmem:[#allocation2 + $0x250] sm:$0xff]  ;;  %v109_v33 = vld [vmem:[#allocation2 + $0x248] sm:$0xff]  ;;  %v124_v34 = vld [vmem:[#allocation2 + $0x2c0] sm:$0xff] }
  0x3e   :  { %735 = vmatprep.subr.mxu1 %v93_v37  ;;  %701 = vmatpush3.msra.mxu0 %v45_v38  ;;  %v108_v35 = vld [vmem:[#allocation2 + $0x240] sm:$0xff]  ;;  %v123_v36 = vld [vmem:[#allocation2 + $0x2b8] sm:$0xff]  ;;  %v122_v38 = vld [vmem:[#allocation2 + $0x2b0] sm:$0xff] }
  0x3f   :  { %736 = vmatpush3.msra.mxu1 %v77_v39  ;;  %702 = vmatprep.subr.mxu0 %v60_v40  ;;  %v107_v37 = vld [vmem:[#allocation2 + $0x238] sm:$0xff]  ;;  %v106_v39 = vld [vmem:[#allocation2 + $0x230] sm:$0xff]  ;;  %v121_v40 = vld [vmem:[#allocation2 + $0x2a8] sm:$0xff] }
  0x40   :  { %737 = vmatprep.subr.mxu1 %v92_v41  ;;  %703 = vmatpush3.msra.mxu0 %v44_v42  ;;  %v105_v41 = vld [vmem:[#allocation2 + $0x228] sm:$0xff]  ;;  %v120_v42 = vld [vmem:[#allocation2 + $0x2a0] sm:$0xff] }
  0x41   :  { %738 = vmatpush3.msra.mxu1 %v76_v43  ;;  %704 = vmatprep.subr.mxu0 %v59_v44  ;;  %v104_v43 = vld [vmem:[#allocation2 + $0x220] sm:$0xff]  ;;  %v119_v44 = vld [vmem:[#allocation2 + $0x298] sm:$0xff] }
  0x42   :  { %739 = vmatprep.subr.mxu1 %v91_v45  ;;  %705 = vmatpush3.msra.mxu0 %v43_v46  ;;  %v103_v45 = vld [vmem:[#allocation2 + $0x218] sm:$0xff]  ;;  %v118_v46 = vld [vmem:[#allocation2 + $0x290] sm:$0xff] }
  0x43   :  { %740 = vmatpush3.msra.mxu1 %v75_v47  ;;  %706 = vmatprep.subr.mxu0 %v58_v48  ;;  %v102_v47 = vld [vmem:[#allocation2 + $0x210] sm:$0xff]  ;;  %v117_v48 = vld [vmem:[#allocation2 + $0x288] sm:$0xff] }
  0x44   :  { %741 = vmatprep.subr.mxu1 %v90_v49  ;;  %707 = vmatpush3.msra.mxu0 %v42_v50  ;;  %v101_v49 = vld [vmem:[#allocation2 + $0x208] sm:$0xff]  ;;  %v116_v50 = vld [vmem:[#allocation2 + $0x280] sm:$0xff] }
  0x45   :  { %742 = vmatpush3.msra.mxu1 %v74_v52  ;;  %708 = vmatprep.subr.mxu0 %v57_v53  ;;  %v100_v52 = vld [vmem:[#allocation2 + $0x200] sm:$0xff] }
  0x46   :  { %743 = vmatprep.subr.mxu1 %v89_v54  ;;  %709 = vmatpush3.msra.mxu0 %v41_v55 }
  0x47   :  { %744 = vmatpush3.msra.mxu1 %v73_v56  ;;  %710 = vmatprep.subr.mxu0 %v56_v58 }
  0x48   :  { %745 = vmatprep.subr.mxu1 %v88_v59  ;;  %711 = vmatpush3.msra.mxu0 %v40_v60 }
  0x49   :  { %746 = vmatpush3.msra.mxu1 %v72_v61  ;;  %712 = vmatprep.subr.mxu0 %v55_v62 }
  0x4a   :  { %747 = vmatprep.subr.mxu1 %v87_v63  ;;  %713 = vmatpush3.msra.mxu0 %v39_v2 }
  0x4b   :  { %748 = vmatpush3.msra.mxu1 %v71_v3  ;;  %714 = vmatprep.subr.mxu0 %v54_v4 }
  0x4c   :  { %749 = vmatprep.subr.mxu1 %v86_v5  ;;  %715 = vmatpush3.msra.mxu0 %v38_v6 }
  0x4d   :  { %750 = vmatpush3.msra.mxu1 %v70_v7  ;;  %716 = vmatprep.subr.mxu0 %v53_v8  ;;  %v617_v7 = vld [vmem:[%s1080_s4] ss:$0 sm:$0xff] }
  0x4e   :  { %751 = vmatprep.subr.mxu1 %v85_v9  ;;  %717 = vmatpush3.msra.mxu0 %v37_v12 }
  0x4f   :  { %456 = vmatprep.mubr.f32.mxu0 %v376_v10  ;;  %718 = vmatprep.subr.mxu0 %v52_v13 }
  0x50   :  { %752 = vmatpush3.msra.mxu1 %v69_v14  ;;  %719 = vmatpush3.msra.mxu0 %v36_v15 }
  0x51   :  { %753 = vmatprep.subr.mxu1 %v84_v16  ;;  %457 = vmatmul.mubr.f32.vlgmr.msra.gmra.mxu0 %v368_v0 }
  0x52   :  { %758 = vmatprep.subr.mxu0 %v131_v18  ;;  %754 = vmatpush3.msra.mxu1 %v68_v19 }
  0x53   :  { %526 = vmatprep.mubr.f32.mxu1 %v377_v51  ;;  %759 = vmatpush3.msra.mxu0 %v115_v20 }
  0x54   :  { %527 = vmatmul.mubr.f32.vlgmr.msra.gmra.mxu1 %v375_v11  ;;  %760 = vmatprep.subr.mxu0 %v130_v22 }
  0x55   :  { %596 = vmatprep.mubr.f32.mxu0 %v385_v21  ;;  %761 = vmatpush3.msra.mxu0 %v114_v23 }
  0x56   :  { %762 = vmatprep.subr.mxu0 %v129_v24 }
  0x57   :  { %763 = vmatpush3.msra.mxu0 %v113_v25 }
  0x58   :  { %764 = vmatprep.subr.mxu0 %v128_v26 }
  0x59   :  { %765 = vmatpush3.msra.mxu0 %v112_v27 }
  0x5a   :  { %766 = vmatprep.subr.mxu0 %v127_v28 }
  0x5b   :  { %767 = vmatpush3.msra.mxu0 %v111_v29 }
  0x5c   :  { %768 = vmatprep.subr.mxu0 %v126_v30 }
  0x5d   :  { %769 = vmatpush3.msra.mxu0 %v110_v31 }
  0x5e   :  { %770 = vmatprep.subr.mxu0 %v125_v32 }
  0x5f   :  { %771 = vmatpush3.msra.mxu0 %v109_v33 }
  0x60   :  { %772 = vmatprep.subr.mxu0 %v124_v34 }
  0x61   :  { %773 = vmatpush3.msra.mxu0 %v108_v35 }
  0x62   :  { %774 = vmatprep.subr.mxu0 %v123_v36 }
  0x63   :  { %775 = vmatpush3.msra.mxu0 %v107_v37 }
  0x64   :  { %776 = vmatprep.subr.mxu0 %v122_v38 }
  0x65   :  { %777 = vmatpush3.msra.mxu0 %v106_v39 }
  0x66   :  { %778 = vmatprep.subr.mxu0 %v121_v40 }
  0x67   :  { %779 = vmatpush3.msra.mxu0 %v105_v41 }
  0x68   :  { %780 = vmatprep.subr.mxu0 %v120_v42 }
  0x69   :  { %781 = vmatpush3.msra.mxu0 %v104_v43 }
  0x6a   :  { %782 = vmatprep.subr.mxu0 %v119_v44 }
  0x6b   :  { %783 = vmatpush3.msra.mxu0 %v103_v45 }
  0x6c   :  { %784 = vmatprep.subr.mxu0 %v118_v46 }
  0x6d   :  { %785 = vmatpush3.msra.mxu0 %v102_v47 }
  0x6e   :  { %786 = vmatprep.subr.mxu0 %v117_v48 }
  0x6f   :  { %787 = vmatpush3.msra.mxu0 %v101_v49 }
  0x70   :  { %788 = vmatprep.subr.mxu0 %v116_v50 }
  0x71   :  { %789 = vmatpush3.msra.mxu0 %v100_v52 }
  0x72   :  { %597 = vmatmul.mubr.f32.vlgmr.msra.gmra.mxu0 %v1065_v17 }
  0xf0   :  { %v650_v53 = vpop.f32.mrf.mxu0 }
  0xf1   :  { %v685_v54 = vpop.f32.mrf.mxu1 }
  0xf2   :  { %v651_v55 = vpop.f32.mrf.mxu0 }
  0xf3   :  { %v686_v57 = vpop.f32.mrf.mxu1  ;;  %v652_v60 = vadd.f32 %v651_v55, %v650_v53 }
  0xf4   :  { %v687_v61 = vadd.f32 %v686_v57, %v685_v54 }
  0xf6   :  { %v356_v0 = vadd.f32 %v687_v61, %v652_v60 }
 0x111   :  { %v720_v56 = vpop.f32.mrf.mxu0 }
 0x113   :  { %v721_v58 = vpop.f32.mrf.mxu0 }
 0x114   :  { %v755_v59 = vpop.f32.mrf.mxu1  ;;  %v722_v62 = vadd.f32 %v721_v58, %v720_v56 }
 0x116   :  { %v756_v63 = vpop.f32.mrf.mxu1  ;;  %v459_v1 = vadd.f32 %v722_v62, %v356_v0 }
 0x117   :  { %v757_v2 = vadd.f32 %v756_v63, %v755_v59 }
 0x119   :  { %v529_v5 = vadd.f32 %v757_v2, %v459_v1 }
 0x132   :  { %v790_v3 = vpop.f32.mrf.mxu0 }
 0x134   :  { %v791_v4 = vpop.f32.mrf.mxu0 }
 0x135   :  { %v792_v6 = vadd.f32 %v791_v4, %v790_v3 }
 0x137   :  { %v599_v8 = vadd.f32 %v792_v6, %v529_v5 }
 0x139   :  { %v609_v9 = vadd.f32 %v617_v7, %v599_v8 }
 0x13b   :  { %610 = vst [vmem:[%s1081_s5] sm:$0x3] %v609_v9 }
 0x13c   :  { %615 = vsyncpa [#allocation3], 1 }

</bundles_post_ra>
